<compile_context>
chip_gen: v5e
topology: v5e:2x2
jax: 0.10.0
libtpu: 0.0.40
codegen_flags: <defaults>
</compile_context>

<pallas_src>
import functools
import math

import jax
import jax.numpy as jnp
from jax.experimental import pallas as pl
from jax.experimental.pallas import tpu as pltpu


# ----------------------------- helpers -----------------------------

def _round_up(x, m):
    return ((x + m - 1) // m) * m


def _budget_rows(per_row_bytes, sublane, cap, budget_bytes):
    """Largest row tile (multiple of `sublane`, <= cap) fitting the VMEM budget."""
    tb = budget_bytes // max(per_row_bytes, 1)
    tb = (tb // sublane) * sublane
    return int(max(sublane, min(cap, tb)))


def _choose_tile(batch, sublane, tb_budget):
    """Pick the shared row tile.  Prefer a tile that divides round_up(batch, sublane)
    exactly (no whole-array padding copies of k/v); fall back to the budget tile
    only if the best divisor would leave the grid badly under-tiled."""
    bp = _round_up(batch, sublane)
    tb_budget = max(sublane, min(tb_budget, bp))
    best = sublane
    for t in range(sublane, tb_budget + 1, sublane):
        if bp % t == 0:
            best = t
    if best >= 256 or best * 4 >= tb_budget:
        return best
    return tb_budget


def _norm_f32(x, alpha_ref, bias_ref, eps):
    """alpha * (x - mean) / (unbiased_std + eps) + bias, in f32.

    Centered two-pass form kept for exact parity with torch.std (N-1, eps on std).
    The per-row divide is hoisted to a (rows,1) reciprocal (cheap, exact)."""
    d = x.shape[-1]
    mean = jnp.mean(x, axis=-1, keepdims=True)             # (TB, 1)
    centered = x - mean                                    # (TB, D), reused (not remat)
    var = jnp.sum(centered * centered, axis=-1, keepdims=True) / (d - 1)
    inv = 1.0 / (jnp.sqrt(var) + eps)                      # (TB, 1) exact divide
    alpha = alpha_ref[...].astype(jnp.float32)             # (1, D) cast hoisted
    bias = bias_ref[...].astype(jnp.float32)               # (1, D)
    return centered * inv * alpha + bias


# --------------------- stage 1: attention + residual ---------------------

def _attn_residual_kernel(q_ref, k_ref, v_ref, o_ref, *, scale):
    q = q_ref[...].astype(jnp.float32)      # (TB, 1, D)
    k = k_ref[...].astype(jnp.float32)      # (TB, T, D)
    v = v_ref[...].astype(jnp.float32)      # (TB, T, D)

    # scores[b, t] = sum_d q[b, d] * k[b, t, d] * (1/sqrt(d_model))
    s = jnp.sum(q * k, axis=-1, keepdims=True) * scale     # (TB, T, 1)
    m = jnp.max(s, axis=1, keepdims=True)                  # (TB, 1, 1)
    e = jnp.exp(s - m)                                     # (TB, T, 1)
    denom = jnp.sum(e, axis=1, keepdims=True)              # (TB, 1, 1)
    p = e * (1.0 / denom)                                  # softmax over T
    attn = jnp.sum(p * v, axis=1, keepdims=True)           # (TB, 1, D)

    o_ref[...] = (attn + q).astype(o_ref.dtype)            # A + q (residual)


# --------------- stage 2: norm_1 -> FF -> residual -> norm_2 ---------------

def _norm_ff_norm_kernel(x_ref, w1_ref, b1_ref, w2_ref, b2_ref,
                         a1_ref, be1_ref, a2_ref, be2_ref, o_ref, *, eps):
    x = x_ref[...].astype(jnp.float32)                     # (TB, D) = A + q
    q_ = _norm_f32(x, a1_ref, be1_ref, eps)                # norm_1

    # FeedForward: relu(q_ @ W1 + b1) @ W2 + b2   (dropout = identity at inference)
    h = jnp.dot(q_, w1_ref[...].astype(jnp.float32),
                preferred_element_type=jnp.float32,
                precision=jax.lax.Precision.HIGHEST)       # (TB, DF)
    h = jnp.maximum(h + b1_ref[...].astype(jnp.float32), 0.0)
    ff = jnp.dot(h, w2_ref[...].astype(jnp.float32),
                 preferred_element_type=jnp.float32,
                 precision=jax.lax.Precision.HIGHEST)      # (TB, D)
    ff = ff + b2_ref[...].astype(jnp.float32)

    out = _norm_f32(q_ + ff, a2_ref, be2_ref, eps)         # norm_2
    o_ref[...] = out.astype(o_ref.dtype)


# ------------------------------ wrapper ------------------------------

@functools.partial(jax.jit, static_argnames=("eps",))
def tx_forward_pallas(q, k, v, w1, b1, w2, b2,
                      alpha1, bias1, alpha2, bias2, *, eps=1e-6):
    """TX forward. q: (b, d_model), k/v: (b, t, d_model). Weights pre-transposed:
    w1: (d_model, d_ff), w2: (d_ff, d_model)."""
    batch, d_model = q.shape
    t = k.shape[1]
    d_ff = w1.shape[1]
    dtype = q.dtype
    itemsize = jnp.dtype(dtype).itemsize
    sub = max(8, 32 // itemsize)          # dtype-aware sublane packing

    cparams = pltpu.CompilerParams(
        dimension_semantics=("parallel",),
        vmem_limit_bytes=64 << 20,
    )
    scale = 1.0 / math.sqrt(d_model)

    # -------- shared row tile for both stages (one pad, no re-pad between) --------
    budget = 16 << 20
    per_row1 = ((2 * t * d_model + 2 * d_model) * itemsize * 2       # pipelined blocks x2
                + (3 * t * d_model + 3 * d_model + 4 * t) * 4)       # f32 temps
    w_bytes = (2 * d_model * d_ff + 2 * d_ff + 6 * d_model) * itemsize * 2
    per_row2 = (2 * d_model) * itemsize * 2 + (6 * d_model + 2 * d_ff) * 4
    tb_budget = min(
        _budget_rows(per_row1, sub, cap=2048, budget_bytes=budget),
        _budget_rows(per_row2, sub, cap=2048, budget_bytes=max(4 << 20, budget - w_bytes)),
    )
    tb = _choose_tile(batch, sub, tb_budget)
    batch_p = _round_up(batch, tb)

    q3 = q.reshape(batch, 1, d_model)
    if batch_p != batch:
        pad = batch_p - batch
        q3 = jnp.pad(q3, ((0, pad), (0, 0), (0, 0)))
        k = jnp.pad(k, ((0, pad), (0, 0), (0, 0)))
        v = jnp.pad(v, ((0, pad), (0, 0), (0, 0)))

    # ---------------- stage 1: attention + residual ----------------
    x1 = pl.pallas_call(
        functools.partial(_attn_residual_kernel, scale=scale),
        out_shape=jax.ShapeDtypeStruct((batch_p, 1, d_model), dtype),
        grid_spec=pltpu.PrefetchScalarGridSpec(
            num_scalar_prefetch=0,
            grid=(batch_p // tb,),
            in_specs=[
                pl.BlockSpec((tb, 1, d_model), lambda i: (i, 0, 0)),  # q
                pl.BlockSpec((tb, t, d_model), lambda i: (i, 0, 0)),  # k
                pl.BlockSpec((tb, t, d_model), lambda i: (i, 0, 0)),  # v
            ],
            out_specs=pl.BlockSpec((tb, 1, d_model), lambda i: (i, 0, 0)),
        ),
        compiler_params=cparams,
    )(q3, k, v)
    x1 = x1.reshape(batch_p, d_model)          # free unit-dim collapse, done in XLA

    # -------- stage 2: norm_1 -> FF -> residual -> norm_2 --------
    w1_2 = w1.reshape(d_model, d_ff)
    b1_2 = b1.reshape(1, d_ff)
    w2_2 = w2.reshape(d_ff, d_model)
    b2_2 = b2.reshape(1, d_model)
    a1_2 = alpha1.reshape(1, d_model)
    be1_2 = bias1.reshape(1, d_model)
    a2_2 = alpha2.reshape(1, d_model)
    be2_2 = bias2.reshape(1, d_model)

    out = pl.pallas_call(
        functools.partial(_norm_ff_norm_kernel, eps=eps),
        out_shape=jax.ShapeDtypeStruct((batch_p, d_model), dtype),
        grid_spec=pltpu.PrefetchScalarGridSpec(
            num_scalar_prefetch=0,
            grid=(batch_p // tb,),
            in_specs=[
                pl.BlockSpec((tb, d_model), lambda i: (i, 0)),       # x1 = A + q
                pl.BlockSpec((d_model, d_ff), lambda i: (0, 0)),     # w1 (resident)
                pl.BlockSpec((1, d_ff), lambda i: (0, 0)),           # b1
                pl.BlockSpec((d_ff, d_model), lambda i: (0, 0)),     # w2
                pl.BlockSpec((1, d_model), lambda i: (0, 0)),        # b2
                pl.BlockSpec((1, d_model), lambda i: (0, 0)),        # alpha1
                pl.BlockSpec((1, d_model), lambda i: (0, 0)),        # bias1
                pl.BlockSpec((1, d_model), lambda i: (0, 0)),        # alpha2
                pl.BlockSpec((1, d_model), lambda i: (0, 0)),        # bias2
            ],
            out_specs=pl.BlockSpec((tb, d_model), lambda i: (i, 0)),
        ),
        compiler_params=cparams,
    )(x1, w1_2, b1_2, w2_2, b2_2, a1_2, be1_2, a2_2, be2_2)
    return out[:batch]


# ------------------------- pure-JAX reference -------------------------

def tx_reference(q, k, v, w1, b1, w2, b2, a1, be1, a2, be2, eps=1e-6):
    d_model = q.shape[-1]
    scores = jnp.sum(q[:, None, :] * k, axis=-1) / math.sqrt(d_model)
    p = jax.nn.softmax(scores, axis=-1)
    attn = jnp.sum(p[:, :, None] * v, axis=1)

    def norm(x, alpha, bias):
        mean = jnp.mean(x, axis=-1, keepdims=True)
        c = x - mean
        std = jnp.sqrt(jnp.sum(c * c, axis=-1, keepdims=True) / (x.shape[-1] - 1))
        return alpha * c / (std + eps) + bias

    q_ = norm(attn + q, a1, be1)
    h = jnp.maximum(jnp.dot(q_, w1, precision=jax.lax.Precision.HIGHEST) + b1, 0.0)
    ff = jnp.dot(h, w2, precision=jax.lax.Precision.HIGHEST) + b2
    return norm(q_ + ff, a2, be2)


if __name__ == "__main__":
    key = jax.random.PRNGKey(0)
    batch, t, d_model = 4, 8, 64
    d_ff = d_model // 2

    keys = jax.random.split(key, 7)
    q = jax.random.normal(keys[0], (batch, d_model), dtype=jnp.float32)
    k = jax.random.normal(keys[1], (batch, t, d_model), dtype=jnp.float32)
    v = jax.random.normal(keys[2], (batch, t, d_model), dtype=jnp.float32)

    # FeedForward params (std=0.001 like the torch init); stored (in, out) layout.
    w1 = 0.001 * jax.random.normal(keys[3], (d_model, d_ff), dtype=jnp.float32)
    b1 = 0.01 * jax.random.normal(keys[4], (d_ff,), dtype=jnp.float32)
    w2 = 0.001 * jax.random.normal(keys[5], (d_ff, d_model), dtype=jnp.float32)
    b2 = 0.01 * jax.random.normal(keys[6], (d_model,), dtype=jnp.float32)

    # Norm params (torch.ones / torch.zeros init)
    alpha1 = jnp.ones((d_model,), jnp.float32)
    bias1 = jnp.zeros((d_model,), jnp.float32)
    alpha2 = jnp.ones((d_model,), jnp.float32)
    bias2 = jnp.zeros((d_model,), jnp.float32)

    out = tx_forward_pallas(q, k, v, w1, b1, w2, b2, alpha1, bias1, alpha2, bias2)
    out = jax.block_until_ready(out)

    ref = tx_reference(q, k, v, w1, b1, w2, b2, alpha1, bias1, alpha2, bias2)
    assert out.shape == (batch, d_model)
    err = float(jnp.max(jnp.abs(out - ref)))
    assert jnp.allclose(out, ref, atol=1e-3, rtol=1e-3), f"mismatch vs reference, max abs err {err}"
    print("KERNEL_OK")
</pallas_src>

<mosaic_0001>
module attributes {stable_mosaic.version = 11 : i64} {
  func.func @_attn_residual_kernel(%arg0: i32, %arg1: memref<8x1x64xf32, #tpu.memory_space<vmem>>, %arg2: memref<8x8x64xf32, #tpu.memory_space<vmem>>, %arg3: memref<8x8x64xf32, #tpu.memory_space<vmem>>, %arg4: memref<8x1x64xf32, #tpu.memory_space<vmem>>) attributes {dimension_semantics = [#tpu.dimension_semantics<parallel>], iteration_bounds = array<i64: 1>, scalar_prefetch = 0 : i64, scratch_operands = 0 : i64, tpu.core_type = #tpu.core_type<tc>, window_params = [{transform_indices = @transform_0, window_bounds = array<i64: 8, 1, 64>}, {transform_indices = @transform_1, window_bounds = array<i64: 8, 8, 64>}, {transform_indices = @transform_2, window_bounds = array<i64: 8, 8, 64>}, {transform_indices = @transform_3, window_bounds = array<i64: 8, 1, 64>}]} {
    %c0 = arith.constant 0 : index
    %c0_0 = arith.constant 0 : index
    %c0_1 = arith.constant 0 : index
    %0 = vector.load %arg1[%c0, %c0_0, %c0_1] : memref<8x1x64xf32, #tpu.memory_space<vmem>>, vector<8x1x64xf32>
    %c0_2 = arith.constant 0 : index
    %c0_3 = arith.constant 0 : index
    %c0_4 = arith.constant 0 : index
    %1 = vector.load %arg2[%c0_2, %c0_3, %c0_4] : memref<8x8x64xf32, #tpu.memory_space<vmem>>, vector<8x8x64xf32>
    %c0_5 = arith.constant 0 : index
    %c0_6 = arith.constant 0 : index
    %c0_7 = arith.constant 0 : index
    %2 = vector.load %arg3[%c0_5, %c0_6, %c0_7] : memref<8x8x64xf32, #tpu.memory_space<vmem>>, vector<8x8x64xf32>
    %3 = vector.broadcast %0 : vector<8x1x64xf32> to vector<8x8x64xf32>
    %4 = arith.mulf %3, %1 : vector<8x8x64xf32>
    %cst = arith.constant dense<0.000000e+00> : vector<8x8xf32>
    %5 = vector.multi_reduction <add>, %4, %cst [2] : vector<8x8x64xf32> to vector<8x8xf32>
    %6 = vector.shape_cast %5 : vector<8x8xf32> to vector<8x8x1xf32>
    %cst_8 = arith.constant 1.250000e-01 : f32
    %7 = vector.broadcast %cst_8 : f32 to vector<8x8x1xf32>
    %8 = arith.mulf %6, %7 : vector<8x8x1xf32>
    %cst_9 = arith.constant dense<0xFF800000> : vector<8x1xf32>
    %9 = vector.multi_reduction <maximumf>, %8, %cst_9 [1] : vector<8x8x1xf32> to vector<8x1xf32>
    %10 = vector.shape_cast %9 : vector<8x1xf32> to vector<8x1x1xf32>
    %11 = vector.broadcast %10 : vector<8x1x1xf32> to vector<8x8x1xf32>
    %12 = arith.subf %8, %11 : vector<8x8x1xf32>
    %13 = math.exp %12 : vector<8x8x1xf32>
    %cst_10 = arith.constant dense<0.000000e+00> : vector<8x1xf32>
    %14 = vector.multi_reduction <add>, %13, %cst_10 [1] : vector<8x8x1xf32> to vector<8x1xf32>
    %15 = vector.shape_cast %14 : vector<8x1xf32> to vector<8x1x1xf32>
    %cst_11 = arith.constant 1.000000e+00 : f32
    %16 = vector.broadcast %cst_11 : f32 to vector<8x1x1xf32>
    %17 = arith.divf %16, %15 : vector<8x1x1xf32>
    %18 = vector.broadcast %17 : vector<8x1x1xf32> to vector<8x8x1xf32>
    %19 = arith.mulf %13, %18 : vector<8x8x1xf32>
    %20 = vector.broadcast %19 : vector<8x8x1xf32> to vector<8x8x64xf32>
    %21 = arith.mulf %20, %2 : vector<8x8x64xf32>
    %cst_12 = arith.constant dense<0.000000e+00> : vector<8x64xf32>
    %22 = vector.multi_reduction <add>, %21, %cst_12 [1] : vector<8x8x64xf32> to vector<8x64xf32>
    %23 = vector.shape_cast %22 : vector<8x64xf32> to vector<8x1x64xf32>
    %24 = arith.addf %23, %0 : vector<8x1x64xf32>
    %c0_13 = arith.constant 0 : index
    %c0_14 = arith.constant 0 : index
    %c0_15 = arith.constant 0 : index
    %25 = vector.load %arg4[%c0_13, %c0_14, %c0_15] : memref<8x1x64xf32, #tpu.memory_space<vmem>>, vector<8x1x64xf32>
    tpu.vector_store %arg4[%c0_13, %c0_14, %c0_15], %24 {strides = array<i32>} : memref<8x1x64xf32, #tpu.memory_space<vmem>>, vector<8x1x64xf32>,
    return
  }
  func.func @transform_0(%arg0: i32) -> (i32, i32, i32) {
    %c0_i32 = arith.constant 0 : i32
    %c0_i32_0 = arith.constant 0 : i32
    %c0_i32_1 = arith.constant 0 : i32
    return %arg0, %c0_i32, %c0_i32_0 : i32, i32, i32
  }
  func.func @transform_1(%arg0: i32) -> (i32, i32, i32) {
    %c0_i32 = arith.constant 0 : i32
    %c0_i32_0 = arith.constant 0 : i32
    %c0_i32_1 = arith.constant 0 : i32
    return %arg0, %c0_i32, %c0_i32_0 : i32, i32, i32
  }
  func.func @transform_2(%arg0: i32) -> (i32, i32, i32) {
    %c0_i32 = arith.constant 0 : i32
    %c0_i32_0 = arith.constant 0 : i32
    %c0_i32_1 = arith.constant 0 : i32
    return %arg0, %c0_i32, %c0_i32_0 : i32, i32, i32
  }
  func.func @transform_3(%arg0: i32) -> (i32, i32, i32) {
    %c0_i32 = arith.constant 0 : i32
    %c0_i32_0 = arith.constant 0 : i32
    %c0_i32_1 = arith.constant 0 : i32
    return %arg0, %c0_i32, %c0_i32_0 : i32, i32, i32
  }
}

module attributes {stable_mosaic.version = 11 : i64} {
  func.func @_norm_ff_norm_kernel(%arg0: i32, %arg1: memref<8x64xf32, #tpu.memory_space<vmem>>, %arg2: memref<64x32xf32, #tpu.memory_space<vmem>>, %arg3: memref<1x32xf32, #tpu.memory_space<vmem>>, %arg4: memref<32x64xf32, #tpu.memory_space<vmem>>, %arg5: memref<1x64xf32, #tpu.memory_space<vmem>>, %arg6: memref<1x64xf32, #tpu.memory_space<vmem>>, %arg7: memref<1x64xf32, #tpu.memory_space<vmem>>, %arg8: memref<1x64xf32, #tpu.memory_space<vmem>>, %arg9: memref<1x64xf32, #tpu.memory_space<vmem>>, %arg10: memref<8x64xf32, #tpu.memory_space<vmem>>) attributes {dimension_semantics = [#tpu.dimension_semantics<parallel>], iteration_bounds = array<i64: 1>, scalar_prefetch = 0 : i64, scratch_operands = 0 : i64, tpu.core_type = #tpu.core_type<tc>, window_params = [{transform_indices = @transform_0, window_bounds = array<i64: 8, 64>}, {pipeline_mode = #tpu.pipeline_mode<synchronous>, transform_indices = @transform_1, window_bounds = array<i64: 64, 32>}, {pipeline_mode = #tpu.pipeline_mode<synchronous>, transform_indices = @transform_2, window_bounds = array<i64: 1, 32>}, {pipeline_mode = #tpu.pipeline_mode<synchronous>, transform_indices = @transform_3, window_bounds = array<i64: 32, 64>}, {pipeline_mode = #tpu.pipeline_mode<synchronous>, transform_indices = @transform_4, window_bounds = array<i64: 1, 64>}, {pipeline_mode = #tpu.pipeline_mode<synchronous>, transform_indices = @transform_5, window_bounds = array<i64: 1, 64>}, {pipeline_mode = #tpu.pipeline_mode<synchronous>, transform_indices = @transform_6, window_bounds = array<i64: 1, 64>}, {pipeline_mode = #tpu.pipeline_mode<synchronous>, transform_indices = @transform_7, window_bounds = array<i64: 1, 64>}, {pipeline_mode = #tpu.pipeline_mode<synchronous>, transform_indices = @transform_8, window_bounds = array<i64: 1, 64>}, {transform_indices = @transform_9, window_bounds = array<i64: 8, 64>}]} {
    %c0 = arith.constant 0 : index
    %c0_0 = arith.constant 0 : index
    %0 = vector.load %arg1[%c0, %c0_0] : memref<8x64xf32, #tpu.memory_space<vmem>>, vector<8x64xf32>
    %cst = arith.constant dense<0.000000e+00> : vector<8xf32>
    %1 = vector.multi_reduction <add>, %0, %cst [1] : vector<8x64xf32> to vector<8xf32>
    %2 = vector.shape_cast %1 : vector<8xf32> to vector<8x1xf32>
    %cst_1 = arith.constant 6.400000e+01 : f32
    %3 = vector.broadcast %cst_1 : f32 to vector<8x1xf32>
    %4 = arith.divf %2, %3 : vector<8x1xf32>
    %5 = vector.broadcast %4 : vector<8x1xf32> to vector<8x64xf32>
    %6 = arith.subf %0, %5 : vector<8x64xf32>
    %7 = arith.mulf %6, %6 : vector<8x64xf32>
    %cst_2 = arith.constant dense<0.000000e+00> : vector<8xf32>
    %8 = vector.multi_reduction <add>, %7, %cst_2 [1] : vector<8x64xf32> to vector<8xf32>
    %9 = vector.shape_cast %8 : vector<8xf32> to vector<8x1xf32>
    %cst_3 = arith.constant 6.300000e+01 : f32
    %10 = vector.broadcast %cst_3 : f32 to vector<8x1xf32>
    %11 = arith.divf %9, %10 : vector<8x1xf32>
    %12 = math.sqrt %11 : vector<8x1xf32>
    %cst_4 = arith.constant 9.99999997E-7 : f32
    %13 = vector.broadcast %cst_4 : f32 to vector<8x1xf32>
    %14 = arith.addf %12, %13 : vector<8x1xf32>
    %cst_5 = arith.constant 1.000000e+00 : f32
    %15 = vector.broadcast %cst_5 : f32 to vector<8x1xf32>
    %16 = arith.divf %15, %14 : vector<8x1xf32>
    %c0_6 = arith.constant 0 : index
    %c0_7 = arith.constant 0 : index
    %17 = vector.load %arg6[%c0_6, %c0_7] : memref<1x64xf32, #tpu.memory_space<vmem>>, vector<1x64xf32>
    %c0_8 = arith.constant 0 : index
    %c0_9 = arith.constant 0 : index
    %18 = vector.load %arg7[%c0_8, %c0_9] : memref<1x64xf32, #tpu.memory_space<vmem>>, vector<1x64xf32>
    %19 = vector.broadcast %16 : vector<8x1xf32> to vector<8x64xf32>
    %20 = arith.mulf %6, %19 : vector<8x64xf32>
    %21 = vector.broadcast %17 : vector<1x64xf32> to vector<8x64xf32>
    %22 = arith.mulf %20, %21 : vector<8x64xf32>
    %23 = vector.broadcast %18 : vector<1x64xf32> to vector<8x64xf32>
    %24 = arith.addf %22, %23 : vector<8x64xf32>
    %c0_10 = arith.constant 0 : index
    %c0_11 = arith.constant 0 : index
    %25 = vector.load %arg2[%c0_10, %c0_11] : memref<64x32xf32, #tpu.memory_space<vmem>>, vector<64x32xf32>
    %cst_12 = arith.constant dense<0.000000e+00> : vector<8x32xf32>
    %26 = tpu.matmul %24, %25, %cst_12 {dimension_numbers = #tpu.dot_dimension_numbers<[1], [0], [0], [1], [0, 0, 1, 1], [], []>, precision = #tpu.contract_precision<fp32>} : vector<8x64xf32>, vector<64x32xf32>, vector<8x32xf32> -> vector<8x32xf32>
    %c0_13 = arith.constant 0 : index
    %c0_14 = arith.constant 0 : index
    %27 = vector.load %arg3[%c0_13, %c0_14] : memref<1x32xf32, #tpu.memory_space<vmem>>, vector<1x32xf32>
    %28 = vector.broadcast %27 : vector<1x32xf32> to vector<8x32xf32>
    %29 = arith.addf %26, %28 : vector<8x32xf32>
    %cst_15 = arith.constant 0.000000e+00 : f32
    %30 = vector.broadcast %cst_15 : f32 to vector<8x32xf32>
    %31 = arith.maximumf %29, %30 : vector<8x32xf32>
    %c0_16 = arith.constant 0 : index
    %c0_17 = arith.constant 0 : index
    %32 = vector.load %arg4[%c0_16, %c0_17] : memref<32x64xf32, #tpu.memory_space<vmem>>, vector<32x64xf32>
    %cst_18 = arith.constant dense<0.000000e+00> : vector<8x64xf32>
    %33 = tpu.matmul %31, %32, %cst_18 {dimension_numbers = #tpu.dot_dimension_numbers<[1], [0], [0], [1], [0, 0, 1, 1], [], []>, precision = #tpu.contract_precision<fp32>} : vector<8x32xf32>, vector<32x64xf32>, vector<8x64xf32> -> vector<8x64xf32>
    %c0_19 = arith.constant 0 : index
    %c0_20 = arith.constant 0 : index
    %34 = vector.load %arg5[%c0_19, %c0_20] : memref<1x64xf32, #tpu.memory_space<vmem>>, vector<1x64xf32>
    %35 = vector.broadcast %34 : vector<1x64xf32> to vector<8x64xf32>
    %36 = arith.addf %33, %35 : vector<8x64xf32>
    %37 = arith.addf %24, %36 : vector<8x64xf32>
    %cst_21 = arith.constant dense<0.000000e+00> : vector<8xf32>
    %38 = vector.multi_reduction <add>, %37, %cst_21 [1] : vector<8x64xf32> to vector<8xf32>
    %39 = vector.shape_cast %38 : vector<8xf32> to vector<8x1xf32>
    %cst_22 = arith.constant 6.400000e+01 : f32
    %40 = vector.broadcast %cst_22 : f32 to vector<8x1xf32>
    %41 = arith.divf %39, %40 : vector<8x1xf32>
    %42 = vector.broadcast %41 : vector<8x1xf32> to vector<8x64xf32>
    %43 = arith.subf %37, %42 : vector<8x64xf32>
    %44 = arith.mulf %43, %43 : vector<8x64xf32>
    %cst_23 = arith.constant dense<0.000000e+00> : vector<8xf32>
    %45 = vector.multi_reduction <add>, %44, %cst_23 [1] : vector<8x64xf32> to vector<8xf32>
    %46 = vector.shape_cast %45 : vector<8xf32> to vector<8x1xf32>
    %cst_24 = arith.constant 6.300000e+01 : f32
    %47 = vector.broadcast %cst_24 : f32 to vector<8x1xf32>
    %48 = arith.divf %46, %47 : vector<8x1xf32>
    %49 = math.sqrt %48 : vector<8x1xf32>
    %cst_25 = arith.constant 9.99999997E-7 : f32
    %50 = vector.broadcast %cst_25 : f32 to vector<8x1xf32>
    %51 = arith.addf %49, %50 : vector<8x1xf32>
    %cst_26 = arith.constant 1.000000e+00 : f32
    %52 = vector.broadcast %cst_26 : f32 to vector<8x1xf32>
    %53 = arith.divf %52, %51 : vector<8x1xf32>
    %c0_27 = arith.constant 0 : index
    %c0_28 = arith.constant 0 : index
    %54 = vector.load %arg8[%c0_27, %c0_28] : memref<1x64xf32, #tpu.memory_space<vmem>>, vector<1x64xf32>
    %c0_29 = arith.constant 0 : index
    %c0_30 = arith.constant 0 : index
    %55 = vector.load %arg9[%c0_29, %c0_30] : memref<1x64xf32, #tpu.memory_space<vmem>>, vector<1x64xf32>
    %56 = vector.broadcast %53 : vector<8x1xf32> to vector<8x64xf32>
    %57 = arith.mulf %43, %56 : vector<8x64xf32>
    %58 = vector.broadcast %54 : vector<1x64xf32> to vector<8x64xf32>
    %59 = arith.mulf %57, %58 : vector<8x64xf32>
    %60 = vector.broadcast %55 : vector<1x64xf32> to vector<8x64xf32>
    %61 = arith.addf %59, %60 : vector<8x64xf32>
    %c0_31 = arith.constant 0 : index
    %c0_32 = arith.constant 0 : index
    %62 = vector.load %arg10[%c0_31, %c0_32] : memref<8x64xf32, #tpu.memory_space<vmem>>, vector<8x64xf32>
    tpu.vector_store %arg10[%c0_31, %c0_32], %61 {strides = array<i32>} : memref<8x64xf32, #tpu.memory_space<vmem>>, vector<8x64xf32>,
    return
  }
  func.func @transform_0(%arg0: i32) -> (i32, i32) {
    %c0_i32 = arith.constant 0 : i32
    %c0_i32_0 = arith.constant 0 : i32
    return %arg0, %c0_i32 : i32, i32
  }
  func.func @transform_1(%arg0: i32) -> (i32, i32) {
    %c0_i32 = arith.constant 0 : i32
    %c0_i32_0 = arith.constant 0 : i32
    %c0_i32_1 = arith.constant 0 : i32
    return %c0_i32, %c0_i32_0 : i32, i32
  }
  func.func @transform_2(%arg0: i32) -> (i32, i32) {
    %c0_i32 = arith.constant 0 : i32
    %c0_i32_0 = arith.constant 0 : i32
    %c0_i32_1 = arith.constant 0 : i32
    return %c0_i32, %c0_i32_0 : i32, i32
  }
  func.func @transform_3(%arg0: i32) -> (i32, i32) {
    %c0_i32 = arith.constant 0 : i32
    %c0_i32_0 = arith.constant 0 : i32
    %c0_i32_1 = arith.constant 0 : i32
    return %c0_i32, %c0_i32_0 : i32, i32
  }
  func.func @transform_4(%arg0: i32) -> (i32, i32) {
    %c0_i32 = arith.constant 0 : i32
    %c0_i32_0 = arith.constant 0 : i32
    %c0_i32_1 = arith.constant 0 : i32
    return %c0_i32, %c0_i32_0 : i32, i32
  }
  func.func @transform_5(%arg0: i32) -> (i32, i32) {
    %c0_i32 = arith.constant 0 : i32
    %c0_i32_0 = arith.constant 0 : i32
    %c0_i32_1 = arith.constant 0 : i32
    return %c0_i32, %c0_i32_0 : i32, i32
  }
  func.func @transform_6(%arg0: i32) -> (i32, i32) {
    %c0_i32 = arith.constant 0 : i32
    %c0_i32_0 = arith.constant 0 : i32
    %c0_i32_1 = arith.constant 0 : i32
    return %c0_i32, %c0_i32_0 : i32, i32
  }
  func.func @transform_7(%arg0: i32) -> (i32, i32) {
    %c0_i32 = arith.constant 0 : i32
    %c0_i32_0 = arith.constant 0 : i32
    %c0_i32_1 = arith.constant 0 : i32
    return %c0_i32, %c0_i32_0 : i32, i32
  }
  func.func @transform_8(%arg0: i32) -> (i32, i32) {
    %c0_i32 = arith.constant 0 : i32
    %c0_i32_0 = arith.constant 0 : i32
    %c0_i32_1 = arith.constant 0 : i32
    return %c0_i32, %c0_i32_0 : i32, i32
  }
  func.func @transform_9(%arg0: i32) -> (i32, i32) {
    %c0_i32 = arith.constant 0 : i32
    %c0_i32_0 = arith.constant 0 : i32
    return %arg0, %c0_i32 : i32, i32
  }
}

</mosaic_0001>

<bundles_post_ra>
// kernel: tx_forward_pallas.2
= control target key start
LH: loop header
LB: loop body
LE: loop exit
PB: predicated region body
PF: predicated region fallthrough
CT: control target
= control target key end

     0   :  { %vm70_vm0 = vcmask 523264   ;;  %s773_s0 = inlined_call_operand.vmem [shape: f32[8,1,64], index: 0, kind: input, shape index: {}]   ;;  %s774_s1 = inlined_call_operand.vmem [shape: f32[8,8,64], index: 1, kind: input, shape index: {}]   ;;  %s775_s2 = inlined_call_operand.vmem [shape: f32[8,8,64], index: 2, kind: input, shape index: {}]   ;;  %s776_s3 = inlined_call_operand.vmem [shape: f32[8,1,64], index: 3, kind: output, shape index: {}]  }
   0x1   :  { %v26_v0 = vld [vmem:[%s774_s1 + $0x20] sm:$0xff]  ;;  %v24_v2 = vld [vmem:[%s774_s1 + $0x10] sm:$0xff]  ;;  %v27_v8 = vld [vmem:[%s774_s1 + $0x28] sm:$0xff] }
   0x2   :  { %v436_v1 = vld [vmem:[%s773_s0 + $0x4] ss:$0 sm:$0xff]  ;;  %v437_v3 = vld [vmem:[%s773_s0 + $0x2] ss:$0 sm:$0xff]  ;;  %v438_v6 = vld [vmem:[%s773_s0] ss:$0 sm:$0xff] }
   0x3   :  { %v66_v4 = vmul.f32 %v436_v1, %v26_v0  ;;  %v22_v5 = vld [vmem:[%s774_s1] sm:$0xff]  ;;  %v64_v7 = vmul.f32 %v437_v3, %v24_v2  ;;  %v25_v12 = vld [vmem:[%s774_s1 + $0x18] sm:$0xff]  ;;  %v23_v15 = vld [vmem:[%s774_s1 + $0x8] sm:$0xff] }
   0x4   :  { %v439_v9 = vld [vmem:[%s773_s0 + $0x5] ss:$0 sm:$0xff]  ;;  %v62_v11 = vmul.f32 %v438_v6, %v22_v5  ;;  %v440_v13 = vld [vmem:[%s773_s0 + $0x3] ss:$0 sm:$0xff]  ;;  %v441_v16 = vld [vmem:[%s773_s0 + $0x1] ss:$0 sm:$0xff] }
   0x5   :  { %v83_v10 = vsel %vm70_vm0, %v66_v4, 0.0  ;;  %v77_v14 = vsel %vm70_vm0, %v64_v7, 0.0  ;;  %v67_v18 = vmul.f32 %v439_v9, %v27_v8  ;;  %v65_v19 = vmul.f32 %v440_v13, %v25_v12  ;;  %v442_v23 = vld [vmem:[%s773_s0 + $0x7] ss:$0 sm:$0xff]  ;;  %v29_v25 = vld [vmem:[%s774_s1 + $0x38] sm:$0xff]  ;;  %v28_v27 = vld [vmem:[%s774_s1 + $0x30] sm:$0xff] }
   0x6   :  { %84 = vadd.xlane.f32.xlu2 %v83_v10  ;;  %78 = vadd.xlane.f32.xlu1 %v77_v14  ;;  %v71_v17 = vsel %vm70_vm0, %v62_v11, 0.0  ;;  %v63_v20 = vmul.f32 %v441_v16, %v23_v15  ;;  %v443_v26 = vld [vmem:[%s773_s0 + $0x6] ss:$0 sm:$0xff]  ;;  %v69_v28 = vmul.f32 %v442_v23, %v29_v25 }
   0x7   :  { %72 = vadd.xlane.f32.xlu0 %v71_v17  ;;  %v86_v21 = vsel %vm70_vm0, %v67_v18, 0.0  ;;  %v80_v22 = vsel %vm70_vm0, %v65_v19, 0.0  ;;  %v68_v29 = vmul.f32 %v443_v26, %v28_v27 }
   0x8   :  { %v74_v24 = vsel %vm70_vm0, %v63_v20, 0.0  ;;  %v92_v30 = vsel %vm70_vm0, %v69_v28, 0.0 }
   0x9   :  { %v89_v31 = vsel %vm70_vm0, %v68_v29, 0.0 }
   0xe   :  { %87 = vadd.xlane.f32.xlu2 %v86_v21  ;;  %81 = vadd.xlane.f32.xlu1 %v80_v22 }
   0xf   :  { %75 = vadd.xlane.f32.xlu0 %v74_v24 }
  0x16   :  { %93 = vadd.xlane.f32.xlu1 %v92_v30 }
  0x17   :  { %90 = vadd.xlane.f32.xlu0 %v89_v31 }
  0x79   :  { %v85_v32 = vpop.xlane.xlu2 %84  ;;  %v79_v34 = vpop.xlane.xlu1 %78 }
  0x7a   :  { %v99_v33 = vmul.f32 0.125, %v85_v32  ;;  %v97_v35 = vmul.f32 0.125, %v79_v34  ;;  %v73_v36 = vpop.xlane.xlu0 %72 }
  0x7b   :  { %v95_v38 = vmul.f32 0.125, %v73_v36 }
  0x7c   :  { %v127_v37 = vrot.slane %v99_v33, 4  ;;  %v115_v39 = vrot.slane %v97_v35, 4 }
  0x7d   :  { %v103_v41 = vrot.slane %v95_v38, 4 }
  0x7e   :  { %v128_v40 = vmax.f32 %v99_v33, %v127_v37  ;;  %v116_v42 = vmax.f32 %v97_v35, %v115_v39 }
  0x7f   :  { %v104_v44 = vmax.f32 %v95_v38, %v103_v41 }
  0x80   :  { %v129_v43 = vrot.slane %v128_v40, 2  ;;  %v117_v45 = vrot.slane %v116_v42, 2 }
  0x81   :  { %v88_v46 = vpop.xlane.xlu2 %87  ;;  %v105_v48 = vrot.slane %v104_v44, 2  ;;  %v82_v50 = vpop.xlane.xlu1 %81 }
  0x82   :  { %v130_v47 = vmax.f32 %v128_v40, %v129_v43  ;;  %v100_v49 = vmul.f32 0.125, %v88_v46  ;;  %v118_v51 = vmax.f32 %v116_v42, %v117_v45  ;;  %v98_v52 = vmul.f32 0.125, %v82_v50  ;;  %v76_v53 = vpop.xlane.xlu0 %75 }
  0x83   :  { %v106_v55 = vmax.f32 %v104_v44, %v105_v48  ;;  %v96_v57 = vmul.f32 0.125, %v76_v53 }
  0x84   :  { %v131_v54 = vrot.slane %v130_v47, 1  ;;  %v133_v56 = vrot.slane %v100_v49, 4  ;;  %v119_v58 = vrot.slane %v118_v51, 1  ;;  %v121_v59 = vrot.slane %v98_v52, 4 }
  0x85   :  { %v107_v61 = vrot.slane %v106_v55, 1  ;;  %v109_v63 = vrot.slane %v96_v57, 4 }
  0x86   :  { %v132_v60 = vmax.f32 %v130_v47, %v131_v54  ;;  %v134_v62 = vmax.f32 %v100_v49, %v133_v56  ;;  %v120_v0 = vmax.f32 %v118_v51, %v119_v58  ;;  %v122_v1 = vmax.f32 %v98_v52, %v121_v59 }
  0x87   :  { %v108_v3 = vmax.f32 %v106_v55, %v107_v61  ;;  %v110_v5 = vmax.f32 %v96_v57, %v109_v63 }
  0x88   :  { %v155_v2 = vsub.f32 %v99_v33, %v132_v60  ;;  %v135_v4 = vrot.slane %v134_v62, 2  ;;  %v153_v6 = vsub.f32 %v97_v35, %v120_v0  ;;  %v123_v7 = vrot.slane %v122_v1, 2 }
  0x89   :  { %v151_v9 = vsub.f32 %v95_v38, %v108_v3  ;;  %v111_v11 = vrot.slane %v110_v5, 2  ;;  %v94_v12 = vpop.xlane.xlu1 %93 }
  0x8a   :  { %v167_v8 = vmul.f32 1.442695, %v155_v2  ;;  %v136_v10 = vmax.f32 %v134_v62, %v135_v4  ;;  %v163_v13 = vmul.f32 1.442695, %v153_v6  ;;  %v124_v14 = vmax.f32 %v122_v1, %v123_v7  ;;  %v91_v16 = vpop.xlane.xlu0 %90 }
  0x8b   :  { %v102_v15 = vmul.f32 0.125, %v94_v12  ;;  %v159_v17 = vmul.f32 1.442695, %v151_v9  ;;  %v112_v19 = vmax.f32 %v110_v5, %v111_v11  ;;  %v552_v22 = vmul.f32 0.125, %v91_v16 }
  0x8c   :  { %444 = vpow2.f32 %v167_v8  ;;  %v137_v18 = vrot.slane %v136_v10, 1  ;;  %v125_v20 = vrot.slane %v124_v14, 1 }
  0x8d   :  { %446 = vpow2.f32 %v163_v13  ;;  %v145_v21 = vrot.slane %v102_v15, 4  ;;  %v113_v24 = vrot.slane %v112_v19, 1  ;;  %v139_v27 = vrot.slane %v552_v22, 4 }
  0x8e   :  { %448 = vpow2.f32 %v159_v17  ;;  %v138_v23 = vmax.f32 %v136_v10, %v137_v18  ;;  %v126_v25 = vmax.f32 %v124_v14, %v125_v20 }
  0x8f   :  { %v146_v26 = vmax.f32 %v102_v15, %v145_v21  ;;  %v114_v29 = vmax.f32 %v112_v19, %v113_v24  ;;  %v140_v32 = vmax.f32 %v552_v22, %v139_v27 }
  0x90   :  { %v156_v28 = vsub.f32 %v100_v49, %v138_v23  ;;  %v154_v30 = vsub.f32 %v98_v52, %v126_v25 }
  0x91   :  { %v147_v31 = vrot.slane %v146_v26, 2  ;;  %v152_v35 = vsub.f32 %v96_v57, %v114_v29  ;;  %v141_v40 = vrot.slane %v140_v32, 2 }
  0x92   :  { %v556_v33 = vpop.eup %444  ;;  %v169_v34 = vmul.f32 1.442695, %v156_v28  ;;  %v165_v38 = vmul.f32 1.442695, %v154_v30 }
  0x93   :  { %v558_v36 = vpop.eup %446  ;;  %v199_v37 = vrot.slane %v556_v33, 4  ;;  %v148_v39 = vmax.f32 %v146_v26, %v147_v31  ;;  %v161_v43 = vmul.f32 1.442695, %v152_v35  ;;  %v142_v48 = vmax.f32 %v140_v32, %v141_v40 }
  0x94   :  { %v561_v41 = vpop.eup %448  ;;  %v187_v42 = vrot.slane %v558_v36, 4  ;;  %450 = vpow2.f32 %v169_v34 }
  0x95   :  { %v200_v44 = vadd.f32 %v556_v33, %v199_v37  ;;  %v175_v45 = vrot.slane %v561_v41, 4  ;;  %452 = vpow2.f32 %v165_v38  ;;  %v149_v46 = vrot.slane %v148_v39, 1 }
  0x96   :  { %v188_v47 = vadd.f32 %v558_v36, %v187_v42  ;;  %454 = vpow2.f32 %v161_v43  ;;  %v143_v56 = vrot.slane %v142_v48, 1 }
  0x97   :  { %v201_v49 = vrot.slane %v200_v44, 2  ;;  %v176_v50 = vadd.f32 %v561_v41, %v175_v45  ;;  %v150_v51 = vmax.f32 %v148_v39, %v149_v46 }
  0x98   :  { %v189_v52 = vrot.slane %v188_v47, 2  ;;  %v144_v6 = vmax.f32 %v142_v48, %v143_v56 }
  0x99   :  { %v202_v53 = vadd.f32 %v201_v49, %v200_v44  ;;  %v177_v54 = vrot.slane %v176_v50, 2  ;;  %v158_v55 = vsub.f32 %v102_v15, %v150_v51 }
  0x9a   :  { %v568_v57 = vpop.eup %450  ;;  %v190_v58 = vadd.f32 %v189_v52, %v188_v47  ;;  %v157_v12 = vsub.f32 %v552_v22, %v144_v6 }
  0x9b   :  { %v570_v59 = vpop.eup %452  ;;  %v203_v60 = vrot.slane %v202_v53, 1  ;;  %v178_v61 = vadd.f32 %v177_v54, %v176_v50  ;;  %v205_v62 = vrot.slane %v568_v57, 4  ;;  %v173_v63 = vmul.f32 1.442695, %v158_v55 }
  0x9c   :  { %v573_v0 = vpop.eup %454  ;;  %v191_v1 = vrot.slane %v190_v58, 1  ;;  %v193_v2 = vrot.slane %v570_v59, 4  ;;  %v171_v25 = vmul.f32 1.442695, %v157_v12 }
  0x9d   :  { %v204_v3 = vadd.f32 %v203_v60, %v202_v53  ;;  %v179_v4 = vrot.slane %v178_v61, 1  ;;  %v206_v5 = vadd.f32 %v568_v57, %v205_v62  ;;  %v181_v9 = vrot.slane %v573_v0, 4 }
  0x9e   :  { %v577_v7 = vadd.f32 %v191_v1, %v190_v58  ;;  %v194_v8 = vadd.f32 %v570_v59, %v193_v2  ;;  %456 = vpow2.f32 %v173_v63  ;;  %v34_v1 = vld [vmem:[%s775_s2 + $0x20] sm:$0xff] }
  0x9f   :  { %458 = vrcp.f32 %v204_v3  ;;  %v582_v10 = vadd.f32 %v179_v4, %v178_v61  ;;  %v207_v11 = vrot.slane %v206_v5, 2  ;;  %v292_v13 = vand.u32 2147483647, %v204_v3 }
  0xa0   :  { %460 = vrcp.f32 %v577_v7  ;;  %v294_v14 = vand.u32 2147483648, %v204_v3  ;;  %v195_v15 = vrot.slane %v194_v8, 2  ;;  %v182_v16 = vadd.f32 %v573_v0, %v181_v9 }
  0xa1   :  { %v262_v17 = vand.u32 2147483647, %v577_v7  ;;  %v264_v18 = vand.u32 2147483648, %v577_v7  ;;  %462 = vrcp.f32 %v582_v10  ;;  %v208_v20 = vadd.f32 %v207_v11, %v206_v5 }
  0xa2   :  { %v196_v21 = vadd.f32 %v195_v15, %v194_v8  ;;  %v183_v23 = vrot.slane %v182_v16, 2  ;;  %vm288_vm1 = vweird.f32 %v204_v3  ;;  %vm258_vm2 = vweird.f32 %v577_v7  ;;  %v32_v8 = vld [vmem:[%s775_s2 + $0x10] sm:$0xff] }
  0xa3   :  { %vm593_vm3 = vcmp.eq.f32.partialorder %v292_v13, 8.507059e+37  ;;  %v295_v29 = vor.u32 1.1754944e-38, %v294_v14  ;;  %v209_v30 = vrot.slane %v208_v20, 1  ;;  %vm598_vm4 = vcmp.eq.f32.partialorder %v262_v17, 8.507059e+37 }
  0xa4   :  { %v589_v19 = vpop.eup %456  ;;  %v197_v31 = vrot.slane %v196_v21, 1  ;;  %v265_v35 = vor.u32 1.1754944e-38, %v264_v18  ;;  %v232_v37 = vand.u32 2147483647, %v582_v10  ;;  %v184_v38 = vadd.f32 %v183_v23, %v182_v16 }
  0xa5   :  { %v459_v24 = vpop.eup %458  ;;  %v217_v22 = vrot.slane %v589_v19, 4  ;;  %v603_v40 = vadd.f32 %v209_v30, %v208_v20  ;;  %vm228_vm6 = vweird.f32 %v582_v10  ;;  %v234_v46 = vand.u32 2147483648, %v582_v10 }
  0xa6   :  { %v461_v26 = vpop.eup %460  ;;  %v284_v27 = vmul.f32 %v459_v24, %v204_v3  ;;  %v605_v42 = vadd.f32 %v197_v31, %v196_v21  ;;  %vm289_vm5 = vweird.f32 %v459_v24  ;;  %v185_v49 = vrot.slane %v184_v38, 1 }
  0xa7   :  { %v254_v32 = vmul.f32 %v461_v26, %v577_v7  ;;  %v218_v43 = vadd.f32 %v589_v19, %v217_v22  ;;  %v463_v44 = vpop.eup %462  ;;  %464 = vrcp.f32 %v603_v40  ;;  %vm259_vm7 = vweird.f32 %v461_v26  ;;  %vm290_vm9 = vmor %vm288_vm1, %vm289_vm5 }
  0xa8   :  { %v285_v39 = vsub.f32 1.0, %v284_v27  ;;  %v224_v48 = vmul.f32 %v463_v44, %v582_v10  ;;  %vm612_vm8 = vcmp.eq.f32.partialorder %v232_v37, 8.507059e+37  ;;  %466 = vpow2.f32 %v171_v25  ;;  %vm260_vm11 = vmor %vm258_vm2, %vm259_vm7  ;;  %v30_v10 = vld [vmem:[%s775_s2] sm:$0xff] }
  0xa9   :  { %v255_v45 = vsub.f32 1.0, %v254_v32  ;;  %468 = vrcp.f32 %v605_v42  ;;  %v219_v54 = vrot.slane %v218_v43, 2  ;;  %vm229_vm10 = vweird.f32 %v463_v44 }
  0xaa   :  { %v286_v47 = vmul.f32 %v459_v24, %v285_v39  ;;  %v225_v53 = vsub.f32 1.0, %v224_v48  ;;  %v307_v56 = vand.u32 2147483647, %v603_v40  ;;  %v309_v58 = vand.u32 2147483648, %v603_v40  ;;  %vm230_vm13 = vmor %vm228_vm6, %vm229_vm10 }
  0xab   :  { %v256_v50 = vmul.f32 %v461_v26, %v255_v45  ;;  %v279_v62 = vand.u32 2147483648, %v605_v42  ;;  %v624_v63 = vadd.f32 %v185_v49, %v184_v38  ;;  %v235_v4 = vor.u32 1.1754944e-38, %v234_v46 }
  0xac   :  { %v287_v52 = vadd.f32 %v459_v24, %v286_v47  ;;  %v226_v61 = vmul.f32 %v463_v44, %v225_v53  ;;  %v277_v5 = vand.u32 2147483647, %v605_v42  ;;  %vm303_vm12 = vweird.f32 %v603_v40 }
  0xad   :  { %v257_v55 = vadd.f32 %v461_v26, %v256_v50  ;;  %v465_v6 = vpop.eup %464  ;;  %vm646_vm14 = vcmp.eq.f32.partialorder %v307_v56, 8.507059e+37  ;;  %v310_v15 = vor.u32 1.1754944e-38, %v309_v58  ;;  %vm273_vm15 = vweird.f32 %v605_v42 }
  0xae   :  { %v291_v60 = vsel %vm290_vm9, %v459_v24, %v287_v52  ;;  %v227_v11 = vadd.f32 %v463_v44, %v226_v61  ;;  %v639_v12 = vpop.eup %466  ;;  %470 = vrcp.f32 %v624_v63  ;;  %v280_v20 = vor.u32 1.1754944e-38, %v279_v62 }
  0xaf   :  { %v296_v2 = vsel %vm593_vm3, %v295_v29, %v291_v60  ;;  %v261_v3 = vsel %vm260_vm11, %v461_v26, %v257_v55  ;;  %v469_v16 = vpop.eup %468  ;;  %vm658_vm1 = vcmp.eq.f32.partialorder %v277_v5, 8.507059e+37  ;;  %vm304_vm2 = vweird.f32 %v465_v6 }
  0xb0   :  { %v347_v7 = vmul.f32 %v556_v33, %v296_v2  ;;  %v266_v9 = vsel %vm598_vm4, %v265_v35, %v261_v3  ;;  %v299_v33 = vmul.f32 %v465_v6, %v603_v40  ;;  %v231_v18 = vsel %vm230_vm13, %v463_v44, %v227_v11  ;;  %vm305_vm6 = vmor %vm303_vm12, %vm304_vm2 }
  0xb1   :  { %v345_v13 = vmul.f32 %v558_v36, %v266_v9  ;;  %v220_v36 = vadd.f32 %v219_v54, %v218_v43  ;;  %v236_v23 = vsel %vm612_vm8, %v235_v4, %v231_v18  ;;  %v269_v22 = vmul.f32 %v469_v16, %v605_v42  ;;  %v35_v54 = vld [vmem:[%s775_s2 + $0x28] sm:$0xff] }
  0xb2   :  { %v355_v17 = vmul.f32 %v347_v7, %v34_v1  ;;  %v300_v24 = vsub.f32 1.0, %v299_v33  ;;  %v343_v27 = vmul.f32 %v561_v41, %v236_v23  ;;  %v247_v28 = vand.u32 2147483647, %v624_v63  ;;  %v33_v1 = vld [vmem:[%s775_s2 + $0x18] sm:$0xff] }
  0xb3   :  { %v353_v21 = vmul.f32 %v345_v13, %v32_v8  ;;  %v270_v32 = vsub.f32 1.0, %v269_v22  ;;  %vm274_vm3 = vweird.f32 %v469_v16  ;;  %vm243_vm4 = vweird.f32 %v624_v63  ;;  %v16_v13 = vld [vmem:[%s773_s0 + $0x2] sm:$0x1] }
  0xb4   :  { %v387_v26 = vsel %vm70_vm0, %v355_v17, 0.0  ;;  %v301_v31 = vmul.f32 %v465_v6, %v300_v24  ;;  %v351_v35 = vmul.f32 %v343_v27, %v30_v10  ;;  %v249_v37 = vand.u32 2147483648, %v624_v63  ;;  %v471_v38 = vpop.eup %470  ;;  %vm275_vm7 = vmor %vm273_vm15, %vm274_vm3  ;;  %v31_v10 = vld [vmem:[%s775_s2 + $0x8] sm:$0xff]  ;;  %v14_v24 = vld [vmem:[%s773_s0] sm:$0x1] }
  0xb5   :  { %v388_v29 = vrot.slane %v387_v26, 4  ;;  %v373_v30 = vsel %vm70_vm0, %v353_v21, 0.0  ;;  %v271_v44 = vmul.f32 %v469_v16, %v270_v32  ;;  %v221_v41 = vrot.slane %v220_v36, 1 }
  0xb6   :  { %v374_v34 = vrot.slane %v373_v30, 4  ;;  %v302_v43 = vadd.f32 %v465_v6, %v301_v31  ;;  %vm423_vm5 = vcmask 516096   ;;  %v359_v46 = vsel %vm70_vm0, %v351_v35, 0.0 }
  0xb7   :  { %v389_v39 = vadd.f32 %v388_v29, %v387_v26  ;;  %v239_v47 = vmul.f32 %v471_v38, %v624_v63  ;;  %v211_v48 = vrot.slane %v639_v12, 4  ;;  %v360_v50 = vrot.slane %v359_v46, 4 }
  0xb8   :  { %v375_v45 = vadd.f32 %v374_v34, %v373_v30  ;;  %v306_v51 = vsel %vm305_vm6, %v465_v6, %v302_v43  ;;  %v272_v52 = vadd.f32 %v469_v16, %v271_v44  ;;  %vm244_vm8 = vweird.f32 %v471_v38 }
  0xb9   :  { %v390_v49 = vrot.slane %v389_v39, 2  ;;  %v311_v55 = vsel %vm646_vm14, %v310_v15, %v306_v51  ;;  %v240_v40 = vsub.f32 1.0, %v239_v47  ;;  %v361_v58 = vadd.f32 %v360_v50, %v359_v46  ;;  %vm245_vm9 = vmor %vm243_vm4, %vm244_vm8 }
  0xba   :  { %v376_v53 = vrot.slane %v375_v45, 2  ;;  %v348_v60 = vmul.f32 %v568_v57, %v311_v55  ;;  %v276_v61 = vsel %vm275_vm7, %v469_v16, %v272_v52  ;;  %v688_v4 = vadd.f32 %v221_v41, %v220_v36  ;;  %v18_v57 = vld [vmem:[%s773_s0 + $0x4] sm:$0x1]  ;;  %v17_v55 = vld [vmem:[%s773_s0 + $0x3] sm:$0x1] }
  0xbb   :  { %v391_v56 = vadd.f32 %v390_v49, %v389_v39  ;;  %v281_v2 = vsel %vm658_vm1, %v280_v20, %v276_v61  ;;  %v241_v3 = vmul.f32 %v471_v38, %v240_v40  ;;  %v362_v5 = vrot.slane %v361_v58, 2 }
  0xbc   :  { %v377_v62 = vadd.f32 %v376_v53, %v375_v45  ;;  %v356_v6 = vmul.f32 %v348_v60, %v35_v54  ;;  %v346_v7 = vmul.f32 %v570_v59, %v281_v2  ;;  %v250_v11 = vor.u32 1.1754944e-38, %v249_v37 }
  0xbd   :  { %v392_v42 = vrot.slane %v391_v56, 1  ;;  %v242_v9 = vadd.f32 %v471_v38, %v241_v3  ;;  %472 = vrcp.f32 %v688_v4  ;;  %v363_v14 = vadd.f32 %v362_v5, %v361_v58 }
  0xbe   :  { %v378_v8 = vrot.slane %v377_v62, 1  ;;  %v394_v15 = vsel %vm70_vm0, %v356_v6, 0.0  ;;  %v354_v16 = vmul.f32 %v346_v7, %v33_v1  ;;  %vm248_vm10 = vcmp.eq.f32.partialorder %v247_v28, 8.507059e+37  ;;  %v15_v7 = vld [vmem:[%s773_s0 + $0x1] sm:$0x1] }
  0xbf   :  { %v393_v33 = vadd.f32 %v392_v42, %v391_v56  ;;  %v395_v17 = vrot.slane %v394_v15, 4  ;;  %v246_v18 = vsel %vm245_vm9, %v471_v38, %v242_v9  ;;  %v364_v36 = vrot.slane %v363_v14, 1  ;;  %v37_v42 = vld [vmem:[%s775_s2 + $0x38] sm:$0xff] }
  0xc0   :  { %v379_v59 = vadd.f32 %v378_v8, %v377_v62  ;;  %v380_v21 = vsel %vm70_vm0, %v354_v16, 0.0  ;;  %v251_v23 = vsel %vm248_vm10, %v250_v11, %v246_v18  ;;  %v212_v28 = vadd.f32 %v639_v12, %v211_v48  ;;  %v19_v48 = vld [vmem:[%s773_s0 + $0x5] sm:$0x1] }
  0xc1   :  { %v419_v20 = vadd.f32 %v393_v33, %v18_v57  ;;  %v396_v63 = vadd.f32 %v395_v17, %v394_v15  ;;  %v381_v25 = vrot.slane %v380_v21, 4  ;;  %v344_v26 = vmul.f32 %v573_v0, %v251_v23  ;;  %v21_v23 = vld [vmem:[%s773_s0 + $0x7] sm:$0x1] }
  0xc2   :  { %v417_v22 = vadd.f32 %v379_v59, %v16_v13  ;;  %v365_v27 = vadd.f32 %v364_v36, %v363_v14  ;;  %v213_v39 = vrot.slane %v212_v28, 2  ;;  %v339_v46 = vand.u32 2147483648, %v688_v4 }
  0xc3   :  { %428 = vst.msk [vmem:[%s776_s3 + $0x4] sm:$0x1] %vm423_vm5, %v419_v20  ;;  %v473_v29 = vpop.eup %472  ;;  %v397_v30 = vrot.slane %v396_v63, 2  ;;  %v382_v31 = vadd.f32 %v381_v25, %v380_v21  ;;  %v352_v32 = vmul.f32 %v344_v26, %v31_v10  ;;  %v337_v51 = vand.u32 2147483647, %v688_v4 }
  0xc4   :  { %426 = vst.msk [vmem:[%s776_s3 + $0x2] sm:$0x1] %vm423_vm5, %v417_v22  ;;  %v415_v34 = vadd.f32 %v365_v27, %v14_v24  ;;  %v329_v0 = vmul.f32 %v473_v29, %v688_v4  ;;  %v214_v47 = vadd.f32 %v213_v39, %v212_v28  ;;  %vm334_vm11 = vweird.f32 %v473_v29 }
  0xc5   :  { %v398_v35 = vadd.f32 %v397_v30, %v396_v63  ;;  %v383_v37 = vrot.slane %v382_v31, 2  ;;  %v366_v38 = vsel %vm70_vm0, %v352_v32, 0.0  ;;  %vm333_vm12 = vweird.f32 %v688_v4  ;;  %v36_v63 = vld [vmem:[%s775_s2 + $0x30] sm:$0xff] }
  0xc6   :  { %424 = vst.msk [vmem:[%s776_s3] sm:$0x1] %vm423_vm5, %v415_v34  ;;  %v367_v43 = vrot.slane %v366_v38, 4  ;;  %v330_v44 = vsub.f32 1.0, %v329_v0  ;;  %v215_v54 = vrot.slane %v214_v47, 1  ;;  %vm335_vm13 = vmor %vm333_vm12, %vm334_vm11  ;;  %v340_v61 = vor.u32 1.1754944e-38, %v339_v46 }
  0xc7   :  { %v399_v41 = vrot.slane %v398_v35, 1  ;;  %v384_v45 = vadd.f32 %v383_v37, %v382_v31  ;;  %vm338_vm14 = vcmp.eq.f32.partialorder %v337_v51, 8.507059e+37 }
  0xc8   :  { %v368_v49 = vadd.f32 %v367_v43, %v366_v38  ;;  %v331_v50 = vmul.f32 %v473_v29, %v330_v44  ;;  %v216_v62 = vadd.f32 %v215_v54, %v214_v47 }
  0xc9   :  { %v400_v52 = vadd.f32 %v399_v41, %v398_v35  ;;  %v385_v53 = vrot.slane %v384_v45, 1  ;;  %v20_v35 = vld [vmem:[%s773_s0 + $0x6] sm:$0x1] }
  0xca   :  { %v369_v40 = vrot.slane %v368_v49, 2  ;;  %v332_v56 = vadd.f32 %v473_v29, %v331_v50  ;;  %474 = vrcp.f32 %v216_v62  ;;  %v324_v59 = vand.u32 2147483648, %v216_v62 }
  0xcb   :  { %v420_v58 = vadd.f32 %v400_v52, %v19_v48  ;;  %v386_v60 = vadd.f32 %v385_v53, %v384_v45  ;;  %v322_v18 = vand.u32 2147483647, %v216_v62  ;;  %vm318_vm1 = vweird.f32 %v216_v62 }
  0xcc   :  { %v370_v1 = vadd.f32 %v369_v40, %v368_v49  ;;  %v336_v2 = vsel %vm335_vm13, %v473_v29, %v332_v56  ;;  %v325_v10 = vor.u32 1.1754944e-38, %v324_v59 }
  0xcd   :  { %429 = vst.msk [vmem:[%s776_s3 + $0x5] sm:$0x1] %vm423_vm5, %v420_v58  ;;  %v418_v3 = vadd.f32 %v386_v60, %v17_v55  ;;  %v341_v5 = vsel %vm338_vm14, %v340_v61, %v336_v2  ;;  %vm323_vm3 = vcmp.eq.f32.partialorder %v322_v18, 8.507059e+37 }
  0xce   :  { %v371_v4 = vrot.slane %v370_v1, 1  ;;  %v350_v6 = vmul.f32 %v589_v19, %v341_v5 }
  0xcf   :  { %427 = vst.msk [vmem:[%s776_s3 + $0x3] sm:$0x1] %vm423_vm5, %v418_v3 }
  0xd0   :  { %v372_v57 = vadd.f32 %v371_v4, %v370_v1  ;;  %v358_v8 = vmul.f32 %v350_v6, %v37_v42  ;;  %v475_v13 = vpop.eup %474 }
  0xd1   :  { %v314_v19 = vmul.f32 %v475_v13, %v216_v62  ;;  %vm319_vm15 = vweird.f32 %v475_v13 }
  0xd2   :  { %v416_v9 = vadd.f32 %v372_v57, %v15_v7  ;;  %v408_v11 = vsel %vm70_vm0, %v358_v8, 0.0  ;;  %vm320_vm2 = vmor %vm318_vm1, %vm319_vm15 }
  0xd3   :  { %v409_v33 = vrot.slane %v408_v11, 4  ;;  %v315_v15 = vsub.f32 1.0, %v314_v19 }
  0xd4   :  { %425 = vst.msk [vmem:[%s776_s3 + $0x1] sm:$0x1] %vm423_vm5, %v416_v9 }
  0xd5   :  { %v410_v14 = vadd.f32 %v409_v33, %v408_v11  ;;  %v316_v17 = vmul.f32 %v475_v13, %v315_v15 }
  0xd7   :  { %v411_v16 = vrot.slane %v410_v14, 2  ;;  %v317_v36 = vadd.f32 %v475_v13, %v316_v17 }
  0xd9   :  { %v412_v20 = vadd.f32 %v411_v16, %v410_v14  ;;  %v321_v24 = vsel %vm320_vm2, %v475_v13, %v317_v36 }
  0xda   :  { %v326_v25 = vsel %vm323_vm3, %v325_v10, %v321_v24 }
  0xdb   :  { %v413_v21 = vrot.slane %v412_v20, 1  ;;  %v349_v26 = vmul.f32 %v639_v12, %v326_v25 }
  0xdd   :  { %v414_v22 = vadd.f32 %v413_v21, %v412_v20  ;;  %v357_v28 = vmul.f32 %v349_v26, %v36_v63 }
  0xdf   :  { %v422_v27 = vadd.f32 %v414_v22, %v21_v23  ;;  %v401_v29 = vsel %vm70_vm0, %v357_v28, 0.0 }
  0xe0   :  { %v402_v30 = vrot.slane %v401_v29, 4 }
  0xe1   :  { %431 = vst.msk [vmem:[%s776_s3 + $0x7] sm:$0x1] %vm423_vm5, %v422_v27 }
  0xe2   :  { %v403_v31 = vadd.f32 %v402_v30, %v401_v29 }
  0xe4   :  { %v404_v32 = vrot.slane %v403_v31, 2 }
  0xe6   :  { %v405_v34 = vadd.f32 %v404_v32, %v403_v31 }
  0xe8   :  { %v406_v0 = vrot.slane %v405_v34, 1 }
  0xea   :  { %v407_v37 = vadd.f32 %v406_v0, %v405_v34 }
  0xec   :  { %v421_v12 = vadd.f32 %v407_v37, %v20_v35 }
  0xee   :  { %430 = vst.msk [vmem:[%s776_s3 + $0x6] sm:$0x1] %vm423_vm5, %v421_v12 }

// kernel: tx_forward_pallas.3
= control target key start
LH: loop header
LB: loop body
LE: loop exit
PB: predicated region body
PF: predicated region fallthrough
CT: control target
= control target key end

     0   :  { %vm33_vm0 = vcmask 523264   ;;  %v622_v2 = vmov 64.0   ;;  %v623_v14 = vmov 63.0   ;;  %vm358_vm9 = vcmask 261120   ;;  %s834_s0 = inlined_call_operand.vmem [shape: f32[8,64], index: 0, kind: input, shape index: {}]   ;;  %s835_s5 = inlined_call_operand.vmem [shape: f32[1,64], index: 5, kind: input, shape index: {}]   ;;  %s836_s6 = inlined_call_operand.vmem [shape: f32[1,64], index: 6, kind: input, shape index: {}]   ;;  %s837_s1 = inlined_call_operand.vmem [shape: f32[64,32], index: 1, kind: input, shape index: {}]   ;;  %s838_s2 = inlined_call_operand.vmem [shape: f32[1,32], index: 2, kind: input, shape index: {}]   ;;  %s839_s3 = inlined_call_operand.vmem [shape: f32[32,64], index: 3, kind: input, shape index: {}]   ;;  %s840_s4 = inlined_call_operand.vmem [shape: f32[1,64], index: 4, kind: input, shape index: {}]   ;;  %s841_s7 = inlined_call_operand.vmem [shape: f32[1,64], index: 7, kind: input, shape index: {}]   ;;  %s842_s8 = inlined_call_operand.vmem [shape: f32[1,64], index: 8, kind: input, shape index: {}]   ;;  %s843_s9 = inlined_call_operand.vmem [shape: f32[8,64], index: 9, kind: output, shape index: {}]  }
   0x1   :  { %v32_v0 = vld [vmem:[%s834_s0] sm:$0xff]  ;;  %610 = vrcp.f32 %v622_v2  ;;  %v104_v18 = vld [vmem:[%s837_s1 + $0x38] sm:$0xff]  ;;  %v103_v21 = vld [vmem:[%s837_s1 + $0x30] sm:$0xff] }
   0x2   :  { %v34_v1 = vsel %vm33_vm0, %v32_v0, 0.0  ;;  %612 = vrcp.f32 %v623_v14  ;;  %v689_v19 = vand.u32 4294901760, %v104_v18  ;;  %v697_v23 = vand.u32 4294901760, %v103_v21  ;;  %v102_v24 = vld [vmem:[%s837_s1 + $0x28] sm:$0xff]  ;;  %v101_v29 = vld [vmem:[%s837_s1 + $0x20] sm:$0xff]  ;;  %v100_v34 = vld [vmem:[%s837_s1 + $0x18] sm:$0xff] }
   0x3   :  { %35 = vadd.xlane.f32.xlu0 %v34_v1  ;;  %v708_v27 = vand.u32 4294901760, %v102_v24  ;;  %v723_v33 = vand.u32 4294901760, %v101_v29  ;;  %v99_v35 = vld [vmem:[%s837_s1 + $0x10] sm:$0xff]  ;;  %v98_v36 = vld [vmem:[%s837_s1 + $0x8] sm:$0xff]  ;;  %v736_v37 = vand.u32 4294901760, %v100_v34  ;;  %v97_v40 = vld [vmem:[%s837_s1] sm:$0xff] }
   0x4   :  { %v695_v22 = vsub.f32 %v104_v18, %v689_v19  ;;  %121 = vmatpush.msra.mxu0 %v689_v19  ;;  %253 = vmatpush.msra.mxu3 %v689_v19  ;;  %v706_v26 = vsub.f32 %v103_v21, %v697_v23  ;;  %v738_v38 = vand.u32 4294901760, %v99_v35  ;;  %v740_v39 = vand.u32 4294901760, %v98_v36 }
   0x5   :  { %v721_v32 = vsub.f32 %v102_v24, %v708_v27  ;;  %v172_v44 = vsub.f32 %v101_v29, %v723_v33  ;;  %v178_v45 = vsub.f32 %v100_v34, %v736_v37  ;;  %v758_v48 = vand.u32 4294901760, %v97_v40  ;;  %v604_v29 = vld [vmem:[%s835_s5] ss:$0 sm:$0xff] }
   0x6   :  { %v155_v25 = vand.u32 4294901760, %v695_v22  ;;  %216 = vmatpush.msra.mxu2 %v695_v22  ;;  %123 = vmatpush.msra.mxu0 %v697_v23  ;;  %v161_v31 = vand.u32 4294901760, %v706_v26  ;;  %v184_v46 = vsub.f32 %v99_v35, %v738_v38  ;;  %v756_v47 = vsub.f32 %v98_v36, %v740_v39 }
   0x7   :  { %v611_v3 = vpop.eup %610  ;;  %255 = vmatpush.msra.mxu3 %v697_v23  ;;  %v167_v43 = vand.u32 4294901760, %v721_v32  ;;  %v173_v52 = vand.u32 4294901760, %v172_v44  ;;  %v179_v53 = vand.u32 4294901760, %v178_v45  ;;  %v196_v56 = vsub.f32 %v97_v40, %v758_v48 }
   0x8   :  { %v38_v4 = vmul.f32 64.0, %v611_v3  ;;  %vm42_vm1 = vweird.f32 %v611_v3  ;;  %v613_v15 = vpop.eup %612  ;;  %v156_v30 = vsub.f32 %v695_v22, %v155_v25  ;;  %219 = vmatpush.msra.mxu2 %v706_v26  ;;  %125 = vmatpush.msra.mxu0 %v708_v27  ;;  %v162_v42 = vsub.f32 %v706_v26, %v161_v31 }
   0x9   :  { %v51_v16 = vmul.f32 63.0, %v613_v15  ;;  %vm55_vm2 = vweird.f32 %v613_v15  ;;  %257 = vmatpush.msra.mxu3 %v708_v27  ;;  %v168_v51 = vsub.f32 %v721_v32, %v167_v43  ;;  %v185_v54 = vand.u32 4294901760, %v184_v46 }
   0xa   :  { %v39_v5 = vsub.f32 1.0, %v38_v4  ;;  %v157_v41 = vand.u32 4294901760, %v156_v30  ;;  %222 = vmatpush.msra.mxu2 %v721_v32  ;;  %127 = vmatpush.msra.mxu0 %v723_v33  ;;  %v163_v50 = vand.u32 4294901760, %v162_v42  ;;  %v191_v55 = vand.u32 4294901760, %v756_v47  ;;  %v605_v32 = vld [vmem:[%s836_s6] ss:$0 sm:$0xff] }
   0xb   :  { %v52_v17 = vsub.f32 1.0, %v51_v16  ;;  %259 = vmatpush.msra.mxu3 %v723_v33  ;;  %v169_v58 = vand.u32 4294901760, %v168_v51  ;;  %v174_v59 = vsub.f32 %v172_v44, %v173_v52  ;;  %v180_v61 = vsub.f32 %v178_v45, %v179_v53  ;;  %v352_v42 = vld [vmem:[%s839_s3 + $0x10] sm:$0xff] }
   0xc   :  { %v40_v6 = vmul.f32 %v611_v3, %v39_v5  ;;  %158 = vmatpush.msra.mxu1 %v157_v41  ;;  %225 = vmatpush.msra.mxu2 %v172_v44  ;;  %v186_v62 = vsub.f32 %v184_v46, %v185_v54  ;;  %v197_v1 = vand.u32 4294901760, %v196_v56  ;;  %v376_v44 = vand.u32 4294901760, %v352_v42 }
   0xd   :  { %v53_v20 = vmul.f32 %v613_v15, %v52_v17  ;;  %129 = vmatpush.msra.mxu0 %v736_v37  ;;  %261 = vmatpush.msra.mxu3 %v736_v37  ;;  %v175_v63 = vand.u32 4294901760, %v174_v59  ;;  %v181_v2 = vand.u32 4294901760, %v180_v61 }
   0xe   :  { %v41_v7 = vadd.f32 %v611_v3, %v40_v6  ;;  %164 = vmatpush.msra.mxu1 %v163_v50  ;;  %228 = vmatpush.msra.mxu2 %v178_v45  ;;  %v198_v4 = vsub.f32 %v196_v56, %v197_v1  ;;  %v351_v45 = vld [vmem:[%s839_s3 + $0x8] sm:$0xff]  ;;  %v350_v50 = vld [vmem:[%s839_s3] sm:$0xff] }
   0xf   :  { %v54_v28 = vadd.f32 %v613_v15, %v53_v20  ;;  %131 = vmatpush.msra.mxu0 %v738_v38  ;;  %263 = vmatpush.msra.mxu3 %v738_v38 }
  0x10   :  { %v678_v8 = vsel %vm42_vm1, %v611_v3, %v41_v7  ;;  %170 = vmatpush.msra.mxu1 %v169_v58  ;;  %231 = vmatpush.msra.mxu2 %v184_v46  ;;  %v187_v3 = vand.u32 4294901760, %v186_v62  ;;  %v199_v6 = vand.u32 4294901760, %v198_v4 }
  0x11   :  { %v762_v49 = vsel %vm55_vm2, %v613_v15, %v54_v28  ;;  %133 = vmatpush.msra.mxu0 %v740_v39  ;;  %265 = vmatpush.msra.mxu3 %v740_v39 }
  0x12   :  { %176 = vmatpush.msra.mxu1 %v175_v63  ;;  %234 = vmatpush.msra.mxu2 %v756_v47 }
  0x13   :  { %135 = vmatpush.msra.mxu0 %v758_v48  ;;  %267 = vmatpush.msra.mxu3 %v758_v48 }
  0x14   :  { %182 = vmatpush.msra.mxu1 %v181_v2  ;;  %237 = vmatpush.msra.mxu2 %v196_v56 }
  0x15   :  { %286 = vmatpush.msrb.mxu0 %v155_v25 }
  0x16   :  { %188 = vmatpush.msra.mxu1 %v187_v3 }
  0x17   :  { %290 = vmatpush.msrb.mxu0 %v161_v31 }
  0x19   :  { %294 = vmatpush.msrb.mxu0 %v167_v43 }
  0x1b   :  { %298 = vmatpush.msrb.mxu0 %v173_v52 }
  0x1d   :  { %302 = vmatpush.msrb.mxu0 %v179_v53 }
  0x1f   :  { %306 = vmatpush.msrb.mxu0 %v185_v54  ;;  %v380_v54 = vand.u32 4294901760, %v350_v50 }
  0x21   :  { %310 = vmatpush.msrb.mxu0 %v191_v55  ;;  %v422_v58 = vsub.f32 %v350_v50, %v380_v54 }
  0x23   :  { %314 = vmatpush.msrb.mxu0 %v197_v1  ;;  %v423_v61 = vand.u32 4294901760, %v422_v58  ;;  %v606_v1 = vld [vmem:[%s838_s2] ss:$0 sm:$0xff] }
  0x25   :  { %v424_v63 = vsub.f32 %v422_v58, %v423_v61 }
  0x76   :  { %v36_v9 = vpop.xlane.xlu0 %35 }
  0x77   :  { %v44_v10 = vmul.f32 %v678_v8, %v36_v9 }
  0x79   :  { %v681_v11 = vsub.f32 %v32_v0, %v44_v10  ;;  %v192_v0 = vsub.f32 %v756_v47, %v191_v55  ;;  %v410_v47 = vsub.f32 %v352_v42, %v376_v44 }
  0x7b   :  { %v46_v12 = vmul.f32 %v681_v11, %v681_v11  ;;  %v193_v5 = vand.u32 4294901760, %v192_v0  ;;  %v411_v52 = vand.u32 4294901760, %v410_v47  ;;  %v425_v0 = vand.u32 4294901760, %v424_v63 }
  0x7d   :  { %v47_v13 = vsel %vm33_vm0, %v46_v12, 0.0  ;;  %194 = vmatpush.msra.mxu1 %v193_v5  ;;  %v412_v56 = vsub.f32 %v410_v47, %v411_v52 }
  0x7e   :  { %48 = vadd.xlane.f32.xlu0 %v47_v13 }
  0x7f   :  { %200 = vmatpush.msra.mxu1 %v199_v6  ;;  %v413_v59 = vand.u32 4294901760, %v412_v56 }
  0x81   :  { %329 = vmatpush.msrb.mxu1 %v689_v19 }
  0x83   :  { %331 = vmatpush.msrb.mxu1 %v697_v23 }
  0x85   :  { %333 = vmatpush.msrb.mxu1 %v708_v27 }
  0x87   :  { %335 = vmatpush.msrb.mxu1 %v723_v33 }
  0x89   :  { %337 = vmatpush.msrb.mxu1 %v736_v37 }
  0x8b   :  { %339 = vmatpush.msrb.mxu1 %v738_v38 }
  0x8d   :  { %341 = vmatpush.msrb.mxu1 %v740_v39 }
  0x8f   :  { %343 = vmatpush.msrb.mxu1 %v758_v48  ;;  %v378_v48 = vand.u32 4294901760, %v351_v45 }
  0x91   :  { %v416_v53 = vsub.f32 %v351_v45, %v378_v48 }
  0xf1   :  { %v49_v57 = vpop.xlane.xlu0 %48 }
  0xf2   :  { %v57_v60 = vmul.f32 %v762_v49, %v49_v57  ;;  %v417_v57 = vand.u32 4294901760, %v416_v53 }
  0xf4   :  { %614 = vrsqrt.f32 %v57_v60  ;;  %vm65_vm3 = vcmp.eq.f32.partialorder %v57_v60, inf  ;;  %v68_v16 = vand.u32 2147483648, %v57_v60  ;;  %vm67_vm4 = vcmp.eq.f32.partialorder %v57_v60, 0.0 }
  0xfa   :  { %v615_v7 = vpop.eup %614 }
  0xfb   :  { %v59_v9 = vmul.f32 %v615_v7, %v57_v60 }
  0xfd   :  { %v60_v10 = vmul.f32 %v615_v7, %v59_v9 }
  0xff   :  { %v61_v12 = vmul.f32 0.5, %v60_v10 }
 0x101   :  { %v62_v13 = vsub.f32 1.5, %v61_v12 }
 0x103   :  { %v63_v14 = vmul.f32 %v615_v7, %v62_v13 }
 0x105   :  { %v64_v15 = vmul.f32 %v63_v14, %v57_v60 }
 0x107   :  { %v66_v17 = vsel %vm65_vm3, %v57_v60, %v64_v15  ;;  %v418_v60 = vsub.f32 %v416_v53, %v417_v57 }
 0x108   :  { %v69_v18 = vsel %vm67_vm4, %v68_v16, %v66_v17 }
 0x109   :  { %v70_v19 = vadd.f32 1e-06, %v69_v18  ;;  %v419_v62 = vand.u32 4294901760, %v418_v60 }
 0x10b   :  { %616 = vrcp.f32 %v70_v19  ;;  %v82_v23 = vand.u32 2147483648, %v70_v19  ;;  %v80_v25 = vand.u32 2147483647, %v70_v19  ;;  %vm76_vm6 = vweird.f32 %v70_v19 }
 0x10d   :  { %v83_v27 = vor.u32 1.1754944e-38, %v82_v23  ;;  %vm81_vm8 = vcmp.eq.f32.partialorder %v80_v25, 8.507059e+37  ;;  %v607_v23 = vld [vmem:[%s840_s4] ss:$0 sm:$0xff] }
 0x111   :  { %v617_v20 = vpop.eup %616 }
 0x112   :  { %v72_v21 = vmul.f32 %v617_v20, %v70_v19  ;;  %vm77_vm5 = vweird.f32 %v617_v20 }
 0x113   :  { %vm78_vm7 = vmor %vm76_vm6, %vm77_vm5 }
 0x114   :  { %v73_v22 = vsub.f32 1.0, %v72_v21 }
 0x116   :  { %v74_v24 = vmul.f32 %v617_v20, %v73_v22 }
 0x118   :  { %v75_v26 = vadd.f32 %v617_v20, %v74_v24 }
 0x11a   :  { %v79_v28 = vsel %vm78_vm7, %v617_v20, %v75_v26 }
 0x11b   :  { %v84_v30 = vsel %vm81_vm8, %v83_v27, %v79_v28 }
 0x11c   :  { %v88_v31 = vmul.f32 %v84_v30, %v681_v11  ;;  %v353_v11 = vld [vmem:[%s839_s3 + $0x18] sm:$0xff] }
 0x11d   :  { %v374_v41 = vand.u32 4294901760, %v353_v11 }
 0x11e   :  { %v92_v33 = vmul.f32 %v604_v29, %v88_v31 }
 0x11f   :  { %v404_v43 = vsub.f32 %v353_v11, %v374_v41  ;;  %375 = vmatpush.msrb.mxu2 %v374_v41 }
 0x120   :  { %v797_v34 = vadd.f32 %v605_v32, %v92_v33 }
 0x121   :  { %v405_v46 = vand.u32 4294901760, %v404_v43  ;;  %377 = vmatpush.msrb.mxu2 %v376_v44 }
 0x122   :  { %v110_v35 = vsel %vm33_vm0, %v797_v34, 0 }
 0x123   :  { %v136_v36 = vand.u32 4294901760, %v110_v35  ;;  %v406_v51 = vsub.f32 %v404_v43, %v405_v46  ;;  %379 = vmatpush.msrb.mxu2 %v378_v48 }
 0x125   :  { %202 = vmatmul.f32.vlgmr.msra.gmra.mxu1 %v136_v36  ;;  %v137_v37 = vsub.f32 %v110_v35, %v136_v36  ;;  %v407_v55 = vand.u32 4294901760, %v406_v51  ;;  %381 = vmatpush.msrb.mxu2 %v380_v54 }
 0x126   :  { %535 = vmatpush.msra.mxu1 %v374_v41 }
 0x127   :  { %240 = vmatmul.f32.vlgmr.msra.gmra.mxu2 %v137_v37  ;;  %v138_v38 = vand.u32 4294901760, %v137_v37  ;;  %408 = vmatpush.msrb.mxu3 %v407_v55 }
 0x128   :  { %537 = vmatpush.msra.mxu1 %v376_v44  ;;  %446 = vmatpush.msra.mxu2 %v404_v43 }
 0x129   :  { %271 = vmatmul.f32.vlgmr.msra.gmra.mxu3 %v138_v38  ;;  %v139_v39 = vsub.f32 %v137_v37, %v138_v38 }
 0x12a   :  { %539 = vmatpush.msra.mxu1 %v378_v48  ;;  %414 = vmatpush.msrb.mxu3 %v413_v59 }
 0x12b   :  { %v140_v40 = vand.u32 4294901760, %v139_v39  ;;  %449 = vmatpush.msra.mxu2 %v410_v47 }
 0x12c   :  { %541 = vmatpush.msra.mxu1 %v380_v54  ;;  %420 = vmatpush.msrb.mxu3 %v419_v62  ;;  %v608_v62 = vld [vmem:[%s841_s7] ss:$0 sm:$0xff] }
 0x12d   :  { %141 = vmatmul.f32.vlgmr.msra.gmra.mxu0 %v140_v40  ;;  %345 = vmatmul.f32.vlgmr.msrb.gmra.mxu1 %v136_v36 }
 0x12e   :  { %504 = vmatpush.msra.mxu0 %v405_v46  ;;  %452 = vmatpush.msra.mxu2 %v416_v53 }
 0x12f   :  { %426 = vmatpush.msrb.mxu3 %v425_v0 }
 0x130   :  { %508 = vmatpush.msra.mxu0 %v411_v52  ;;  %455 = vmatpush.msra.mxu2 %v422_v58 }
 0x131   :  { %475 = vmatpush.msra.mxu3 %v374_v41 }
 0x132   :  { %512 = vmatpush.msra.mxu0 %v417_v57 }
 0x133   :  { %477 = vmatpush.msra.mxu3 %v376_v44 }
 0x134   :  { %516 = vmatpush.msra.mxu0 %v423_v61 }
 0x135   :  { %316 = vmatmul.f32.vlgmr.msrb.gmra.mxu0 %v136_v36  ;;  %479 = vmatpush.msra.mxu3 %v378_v48 }
 0x137   :  { %481 = vmatpush.msra.mxu3 %v380_v54 }
 0x1a2   :  { %v203_v2 = vpop.f32.mrf.mxu1 }
 0x1aa   :  { %v142_v3 = vpop.f32.mrf.mxu0  ;;  %v241_v6 = vpop.f32.mrf.mxu2 }
 0x1ab   :  { %v143_v4 = vadd.f32 %v606_v1, %v142_v3  ;;  %v346_v14 = vpop.f32.mrf.mxu1  ;;  %v609_v1 = vld [vmem:[%s842_s8] ss:$0 sm:$0xff] }
 0x1ac   :  { %v272_v9 = vpop.f32.mrf.mxu3 }
 0x1ad   :  { %v204_v5 = vadd.f32 %v203_v2, %v143_v4 }
 0x1af   :  { %v242_v7 = vadd.f32 %v241_v6, %v204_v5 }
 0x1b1   :  { %v273_v10 = vadd.f32 %v272_v9, %v242_v7 }
 0x1b2   :  { %v317_v12 = vpop.f32.mrf.mxu0 }
 0x1b3   :  { %v318_v13 = vadd.f32 %v317_v12, %v273_v10 }
 0x1b5   :  { %v347_v15 = vadd.f32 %v346_v14, %v318_v13 }
 0x1b7   :  { %v349_v16 = vmax.f32 %v347_v15, 0.0 }
 0x1b9   :  { %v360_v17 = vsel %vm358_vm9, %v349_v16, 0 }
 0x1ba   :  { %v382_v18 = vand.u32 4294901760, %v360_v17 }
 0x1bc   :  { %v383_v19 = vsub.f32 %v360_v17, %v382_v18  ;;  %428 = vmatmul.f32.vlgmr.msrb.gmra.mxu3 %v382_v18  ;;  %518 = vmatmul.f32.vlgmr.msra.gmra.mxu0 %v382_v18 }
 0x1bd   :  { %543 = vmatmul.f32.vlgmr.msra.gmra.mxu1 %v382_v18 }
 0x1be   :  { %v384_v20 = vand.u32 4294901760, %v383_v19 }
 0x1c0   :  { %v385_v21 = vsub.f32 %v383_v19, %v384_v20 }
 0x1c2   :  { %v386_v22 = vand.u32 4294901760, %v385_v21 }
 0x1c4   :  { %387 = vmatmul.f32.vlgmr.msrb.gmra.mxu2 %v386_v22  ;;  %485 = vmatmul.f32.vlgmr.msra.gmra.mxu3 %v384_v20 }
 0x1cc   :  { %458 = vmatmul.f32.vlgmr.msra.gmra.mxu2 %v383_v19 }
 0x239   :  { %v519_v32 = vpop.f32.mrf.mxu0 }
 0x23a   :  { %v544_v35 = vpop.f32.mrf.mxu1 }
 0x23f   :  { %v429_v24 = vpop.f32.mrf.mxu3 }
 0x247   :  { %v388_v25 = vpop.f32.mrf.mxu2  ;;  %v486_v30 = vpop.f32.mrf.mxu3 }
 0x248   :  { %v389_v26 = vadd.f32 %v607_v23, %v388_v25 }
 0x24a   :  { %v430_v27 = vadd.f32 %v429_v24, %v389_v26 }
 0x24f   :  { %v459_v28 = vpop.f32.mrf.mxu2 }
 0x250   :  { %v460_v29 = vadd.f32 %v459_v28, %v430_v27 }
 0x252   :  { %v487_v31 = vadd.f32 %v486_v30, %v460_v29 }
 0x254   :  { %v520_v33 = vadd.f32 %v519_v32, %v487_v31 }
 0x256   :  { %v545_v36 = vadd.f32 %v544_v35, %v520_v33 }
 0x258   :  { %v547_v37 = vadd.f32 %v545_v36, %v797_v34 }
 0x25a   :  { %v548_v38 = vsel %vm33_vm0, %v547_v37, 0.0 }
 0x25b   :  { %549 = vadd.xlane.f32.xlu1 %v548_v38 }
 0x2ce   :  { %v550_v39 = vpop.xlane.xlu1 %549 }
 0x2cf   :  { %v551_v40 = vmul.f32 %v550_v39, %v678_v8 }
 0x2d1   :  { %v552_v11 = vsub.f32 %v547_v37, %v551_v40 }
 0x2d3   :  { %v553_v41 = vmul.f32 %v552_v11, %v552_v11 }
 0x2d5   :  { %v554_v42 = vsel %vm33_vm0, %v553_v41, 0.0 }
 0x2d6   :  { %555 = vadd.xlane.f32.xlu1 %v554_v42 }
 0x349   :  { %v556_v43 = vpop.xlane.xlu1 %555 }
 0x34a   :  { %v557_v44 = vmul.f32 %v556_v43, %v762_v49 }
 0x34c   :  { %618 = vrsqrt.f32 %v557_v44  ;;  %vm565_vm10 = vcmp.eq.f32.partialorder %v557_v44, inf  ;;  %v568_v52 = vand.u32 2147483648, %v557_v44  ;;  %vm567_vm11 = vcmp.eq.f32.partialorder %v557_v44, 0.0 }
 0x352   :  { %v619_v45 = vpop.eup %618 }
 0x353   :  { %v559_v46 = vmul.f32 %v619_v45, %v557_v44 }
 0x355   :  { %v560_v47 = vmul.f32 %v619_v45, %v559_v46 }
 0x357   :  { %v561_v48 = vmul.f32 0.5, %v560_v47 }
 0x359   :  { %v562_v34 = vsub.f32 1.5, %v561_v48 }
 0x35b   :  { %v563_v50 = vmul.f32 %v619_v45, %v562_v34 }
 0x35d   :  { %v564_v51 = vmul.f32 %v563_v50, %v557_v44 }
 0x35f   :  { %v566_v53 = vsel %vm565_vm10, %v557_v44, %v564_v51 }
 0x360   :  { %v569_v8 = vsel %vm567_vm11, %v568_v52, %v566_v53 }
 0x361   :  { %v570_v54 = vadd.f32 1e-06, %v569_v8 }
 0x363   :  { %620 = vrcp.f32 %v570_v54  ;;  %v582_v58 = vand.u32 2147483648, %v570_v54  ;;  %v580_v59 = vand.u32 2147483647, %v570_v54  ;;  %vm576_vm13 = vweird.f32 %v570_v54 }
 0x365   :  { %v583_v61 = vor.u32 1.1754944e-38, %v582_v58  ;;  %vm581_vm15 = vcmp.eq.f32.partialorder %v580_v59, 8.507059e+37 }
 0x369   :  { %v621_v55 = vpop.eup %620 }
 0x36a   :  { %v572_v56 = vmul.f32 %v621_v55, %v570_v54  ;;  %vm577_vm12 = vweird.f32 %v621_v55 }
 0x36b   :  { %vm578_vm14 = vmor %vm576_vm13, %vm577_vm12 }
 0x36c   :  { %v573_v57 = vsub.f32 1.0, %v572_v56 }
 0x36e   :  { %v574_v49 = vmul.f32 %v621_v55, %v573_v57 }
 0x370   :  { %v575_v60 = vadd.f32 %v621_v55, %v574_v49 }
 0x372   :  { %v579_v63 = vsel %vm578_vm14, %v621_v55, %v575_v60 }
 0x373   :  { %v584_v0 = vsel %vm581_vm15, %v583_v61, %v579_v63 }
 0x374   :  { %v588_v2 = vmul.f32 %v584_v0, %v552_v11 }
 0x376   :  { %v592_v3 = vmul.f32 %v608_v62, %v588_v2 }
 0x378   :  { %v596_v4 = vadd.f32 %v609_v1, %v592_v3 }
 0x37a   :  { %597 = vst.msk [vmem:[%s843_s9] sm:$0xff] %vm33_vm0, %v596_v4 }

</bundles_post_ra>
